<compile_context>
chip_gen: v6e
topology: v6e:2x2x1
jax: 0.10.0
libtpu: 0.0.40
codegen_flags: <defaults>
</compile_context>

<pallas_src>
import functools

import jax
import jax.numpy as jnp
from jax.experimental import pallas as pl
from jax.experimental.pallas import tpu as pltpu


# ----------------------------- helpers -------------------------------------


def _cdiv(a, b):
    return -(-a // b)


def _round_up(x, m):
    return _cdiv(x, m) * m


def _sublane_granule(dtype):
    # f32 -> 8, bf16 -> 16, int8/fp8 -> 32 (packed-tile sublane requirement).
    return max(8, 32 // jnp.dtype(dtype).itemsize)


def _pick_tile(dim, default, granule):
    """Balanced tile: multiple of `granule`, <= default, splitting `dim` into
    cdiv(dim, default) roughly equal blocks (limits ragged-block waste)."""
    if dim <= default:
        return _round_up(dim, granule)
    nblocks = _cdiv(dim, default)
    return _round_up(_cdiv(dim, nblocks), granule)


def _pick_tk(K, default):
    """K tile: never ragged (ragged K would let unspecified VMEM feed valid
    outputs).  Use a 128-multiple divisor of K, or the whole K otherwise."""
    if K % 128 != 0:
        # Block dim == full array dim is always legal; avoids padding x.
        # TODO(synk): for huge K that is not a 128 multiple, consider a
        # one-time K pad instead of a whole-K block.
        return K
    c = K // 128
    dmax = max(1, default // 128)
    best = 1
    for d in range(1, dmax + 1):
        if c % d == 0:
            best = d
    return 128 * best


# ----------------------------- kernel --------------------------------------


def _linear_act_kernel(x_ref, w_ref, b_ref, o_ref, acc_ref, *, activation):
    # x_ref: (tm, tk); w_ref: (tk, tn) pre-transposed weight; b_ref: (1, tn)
    # o_ref: (tm, tn); acc_ref: (tm, tn) f32 scratch, resident across K axis.
    @pl.when(pl.program_id(2) == 0)
    def _zero():
        acc_ref[...] = jnp.zeros_like(acc_ref)

    # Plain (M,K)x(K,N) contraction -> MXU-native, no per-step transpose.
    acc_ref[...] += jnp.dot(
        x_ref[...], w_ref[...], preferred_element_type=jnp.float32
    )

    @pl.when(pl.program_id(2) == pl.num_programs(2) - 1)
    def _finalize():
        y = acc_ref[...] + b_ref[...].astype(jnp.float32)
        if activation is not None:
            y = activation(y)
        o_ref[...] = y.astype(o_ref.dtype)


# ----------------------------- wrapper -------------------------------------


def prepare_linear_params(weight, bias, compute_dtype=None):
    """One-time parameter prep (do at init time, NOT per forward call).

    weight: (n_out, n_in) nn.Linear convention; bias: (n_out,).
    Returns (w_t, b_row, n_out) where w_t is (n_in, n_out_pad) — transposed so
    the kernel feeds the MXU a (tk, tn) block — and b_row is (1, n_out_pad) f32.
    """
    weight = jnp.asarray(weight)
    bias = jnp.asarray(bias)
    n_out, _ = weight.shape
    n_pad = _round_up(n_out, 128)

    w_t = weight.T  # (n_in, n_out)
    if n_pad != n_out:
        w_t = jnp.pad(w_t, ((0, 0), (0, n_pad - n_out)))
        bias = jnp.pad(bias, (0, n_pad - n_out))
    if compute_dtype is not None:
        w_t = w_t.astype(compute_dtype)
    b_row = bias.astype(jnp.float32).reshape(1, n_pad)
    return w_t, b_row, int(n_out)


def linear_layer(x, params, activation=None, *, tm=512, tn=512, tk=2048):
    """Pallas equivalent of `layer.forward`: activation(x @ W.T + b)."""
    w_t, b_row, n_out = params
    out_dtype = x.dtype
    if x.dtype != w_t.dtype:
        # Optional reduced-precision matmul path (accumulation stays f32).
        x = x.astype(w_t.dtype)

    B, K = x.shape
    K_w, N = w_t.shape
    assert K == K_w, "x / weight inner-dim mismatch"
    assert b_row.shape == (1, N)

    sub = _sublane_granule(x.dtype)
    out_isz = jnp.dtype(out_dtype).itemsize
    in_isz = jnp.dtype(x.dtype).itemsize

    tm = _pick_tile(B, tm, sub)
    tn = _pick_tile(N, tn, 128)
    tk = _pick_tk(K, tk)

    # Keep the double-buffered footprint v7x-safe (<= ~24 MiB per TensorCore).
    def footprint(tm_, tn_, tk_):
        return (2 * (tm_ * tk_ + tk_ * tn_) * in_isz      # x + w, 2-deep
                + 2 * tm_ * tn_ * out_isz                  # out, 2-deep
                + tm_ * tn_ * 4                            # f32 accumulator
                + 2 * tn_ * 4)                             # bias
    budget = 24 * 1024 * 1024
    while footprint(tm, tn, tk) > budget:
        if tn > 128 and tn >= tm:
            tn = _round_up(tn // 2, 128)
        elif tm > sub:
            tm = _round_up(tm // 2, sub)
        else:
            break  # TODO(synk): pathological whole-K block; accept overflow.

    gm, gn, gk = _cdiv(B, tm), _cdiv(N, tn), K // tk

    # Expose >= 2 blocks along a "parallel" axis so both v7x TensorCores run
    # (neutral on single-core v5e/v6e).
    if gm == 1 and gn == 1:
        if tm >= 2 * sub:
            tm = _round_up(_cdiv(tm, 2), sub)
            gm = _cdiv(B, tm)
        elif tn >= 256:
            tn = _round_up(_cdiv(tn, 2), 128)
            gn = _cdiv(N, tn)

    kernel = functools.partial(_linear_act_kernel, activation=activation)

    out = pl.pallas_call(
        kernel,
        out_shape=jax.ShapeDtypeStruct((B, N), out_dtype),
        grid_spec=pl.GridSpec(
            grid=(gm, gn, gk),
            in_specs=[
                pl.BlockSpec((tm, tk), lambda i, j, k: (i, k)),  # x tile
                pl.BlockSpec((tk, tn), lambda i, j, k: (k, j)),  # W.T tile (MXU-native)
                pl.BlockSpec((1, tn), lambda i, j, k: (0, j)),   # bias tile
            ],
            out_specs=pl.BlockSpec((tm, tn), lambda i, j, k: (i, j)),
            scratch_shapes=[pltpu.VMEM((tm, tn), jnp.float32)],
        ),
        compiler_params=pltpu.CompilerParams(
            dimension_semantics=("parallel", "parallel", "arbitrary"),
            vmem_limit_bytes=48 * 1024 * 1024,
        ),
    )(x, w_t, b_row)

    if N != n_out:
        out = out[:, :n_out]
    return out


# ----------------------------- self test -----------------------------------


if __name__ == "__main__":
    key = jax.random.PRNGKey(0)

    cases = [
        # (B, n_in, n_out, activation)
        (8,   32,   16,  jnp.tanh),  # tiny (below lane width): whole-K block, padded-N params
        (128, 4096, 256, None),      # multi-K-step grid, 2 parallel M blocks, no activation
        (100, 256,  128, jnp.tanh),  # ragged batch: partial final M block, no x padding
    ]

    for idx, (B, n_in, n_out, act) in enumerate(cases):
        k_x, k_w, k_b = jax.random.split(jax.random.fold_in(key, idx), 3)
        bound = 1.0 / float(n_in) ** 0.5
        weight = jax.random.uniform(k_w, (n_out, n_in), jnp.float32, -bound, bound)
        bias = jax.random.uniform(k_b, (n_out,), jnp.float32, -bound, bound)
        x = jax.random.normal(k_x, (B, n_in), jnp.float32)

        params = prepare_linear_params(weight, bias)   # one-time param prep
        out = linear_layer(x, params, activation=act)
        out = jax.block_until_ready(out)

        ref = x @ weight.T + bias
        if act is not None:
            ref = act(ref)
        assert out.shape == (B, n_out), f"case {idx}: bad shape {out.shape}"
        assert jnp.allclose(out, ref, atol=1e-4, rtol=1e-4), f"case {idx}: mismatch"

    print("KERNEL_OK")
</pallas_src>

<mosaic_0001>
module attributes {stable_mosaic.version = 11 : i64} {
  func.func @_linear_act_kernel(%arg0: i32, %arg1: i32, %arg2: i32, %arg3: memref<8x32xf32, #tpu.memory_space<vmem>>, %arg4: memref<32x128xf32, #tpu.memory_space<vmem>>, %arg5: memref<1x128xf32, #tpu.memory_space<vmem>>, %arg6: memref<8x128xf32, #tpu.memory_space<vmem>>, %arg7: memref<8x128xf32, #tpu.memory_space<vmem>>) attributes {dimension_semantics = [#tpu.dimension_semantics<parallel>, #tpu.dimension_semantics<parallel>, #tpu.dimension_semantics<arbitrary>], iteration_bounds = array<i64: 1, 1, 1>, scalar_prefetch = 0 : i64, scratch_operands = 1 : i64, tpu.core_type = #tpu.core_type<tc>, window_params = [{transform_indices = @transform_0, window_bounds = array<i64: 8, 32>}, {transform_indices = @transform_1, window_bounds = array<i64: 32, 128>}, {transform_indices = @transform_2, window_bounds = array<i64: 1, 128>}, {transform_indices = @transform_3, window_bounds = array<i64: 8, 128>}]} {
    %c0_i32 = arith.constant 0 : i32
    %0 = arith.cmpi eq, %arg2, %c0_i32 : i32
    %1 = arith.extui %0 : i1 to i32
    %c0_i32_0 = arith.constant 0 : i32
    %2 = arith.cmpi ne, %1, %c0_i32_0 : i32
    scf.if %2 {
      %cst_10 = arith.constant 0.000000e+00 : f32
      %12 = vector.broadcast %cst_10 : f32 to vector<8x128xf32>
      %c0_11 = arith.constant 0 : index
      %c0_12 = arith.constant 0 : index
      %13 = vector.load %arg7[%c0_11, %c0_12] : memref<8x128xf32, #tpu.memory_space<vmem>>, vector<8x128xf32>
      tpu.vector_store %arg7[%c0_11, %c0_12], %12 {strides = array<i32>} : memref<8x128xf32, #tpu.memory_space<vmem>>, vector<8x128xf32>,
    } else {
    }
    %c0 = arith.constant 0 : index
    %c0_1 = arith.constant 0 : index
    %3 = vector.load %arg7[%c0, %c0_1] : memref<8x128xf32, #tpu.memory_space<vmem>>, vector<8x128xf32>
    %c0_2 = arith.constant 0 : index
    %c0_3 = arith.constant 0 : index
    %4 = vector.load %arg3[%c0_2, %c0_3] : memref<8x32xf32, #tpu.memory_space<vmem>>, vector<8x32xf32>
    %c0_4 = arith.constant 0 : index
    %c0_5 = arith.constant 0 : index
    %5 = vector.load %arg4[%c0_4, %c0_5] : memref<32x128xf32, #tpu.memory_space<vmem>>, vector<32x128xf32>
    %cst = arith.constant dense<0.000000e+00> : vector<8x128xf32>
    %6 = tpu.matmul %4, %5, %cst {dimension_numbers = #tpu.dot_dimension_numbers<[1], [0], [0], [1], [0, 0, 1, 1], [], []>} : vector<8x32xf32>, vector<32x128xf32>, vector<8x128xf32> -> vector<8x128xf32>
    %7 = arith.addf %3, %6 : vector<8x128xf32>
    %c0_6 = arith.constant 0 : index
    %c0_7 = arith.constant 0 : index
    %8 = vector.load %arg7[%c0_6, %c0_7] : memref<8x128xf32, #tpu.memory_space<vmem>>, vector<8x128xf32>
    tpu.vector_store %arg7[%c0_6, %c0_7], %7 {strides = array<i32>} : memref<8x128xf32, #tpu.memory_space<vmem>>, vector<8x128xf32>,
    %c0_i32_8 = arith.constant 0 : i32
    %9 = arith.cmpi eq, %arg2, %c0_i32_8 : i32
    %10 = arith.extui %9 : i1 to i32
    %c0_i32_9 = arith.constant 0 : i32
    %11 = arith.cmpi ne, %10, %c0_i32_9 : i32
    scf.if %11 {
      %c0_10 = arith.constant 0 : index
      %c0_11 = arith.constant 0 : index
      %12 = vector.load %arg7[%c0_10, %c0_11] : memref<8x128xf32, #tpu.memory_space<vmem>>, vector<8x128xf32>
      %c0_12 = arith.constant 0 : index
      %c0_13 = arith.constant 0 : index
      %13 = vector.load %arg5[%c0_12, %c0_13] : memref<1x128xf32, #tpu.memory_space<vmem>>, vector<1x128xf32>
      %14 = vector.broadcast %13 : vector<1x128xf32> to vector<8x128xf32>
      %15 = arith.addf %12, %14 : vector<8x128xf32>
      %16 = math.tanh %15 : vector<8x128xf32>
      %c0_14 = arith.constant 0 : index
      %c0_15 = arith.constant 0 : index
      %17 = vector.load %arg6[%c0_14, %c0_15] : memref<8x128xf32, #tpu.memory_space<vmem>>, vector<8x128xf32>
      tpu.vector_store %arg6[%c0_14, %c0_15], %16 {strides = array<i32>} : memref<8x128xf32, #tpu.memory_space<vmem>>, vector<8x128xf32>,
    } else {
    }
    return
  }
  func.func @transform_0(%arg0: i32, %arg1: i32, %arg2: i32) -> (i32, i32) {
    %c0_i32 = arith.constant 0 : i32
    return %arg0, %arg2 : i32, i32
  }
  func.func @transform_1(%arg0: i32, %arg1: i32, %arg2: i32) -> (i32, i32) {
    %c0_i32 = arith.constant 0 : i32
    return %arg2, %arg1 : i32, i32
  }
  func.func @transform_2(%arg0: i32, %arg1: i32, %arg2: i32) -> (i32, i32) {
    %c0_i32 = arith.constant 0 : i32
    %c0_i32_0 = arith.constant 0 : i32
    return %c0_i32, %arg1 : i32, i32
  }
  func.func @transform_3(%arg0: i32, %arg1: i32, %arg2: i32) -> (i32, i32) {
    %c0_i32 = arith.constant 0 : i32
    return %arg0, %arg1 : i32, i32
  }
}

</mosaic_0001>

<bundles_post_ra>
// kernel: tpu_custom_call.1
= control target key start
LH: loop header
LB: loop body
LE: loop exit
PB: predicated region body
PF: predicated region fallthrough
CT: control target
= control target key end

     0   :  { %8 = vsyncpa [#allocation4], 0  ;;  %s290_s0 = inlined_call_operand.hbm [shape: f32[8,32], index: 0, kind: input, shape index: {}]   ;;  %s291_s1 = inlined_call_operand.hbm [shape: f32[32,128], index: 1, kind: input, shape index: {}]   ;;  %s292_s2 = inlined_call_operand.vmem [shape: f32[1,128], index: 2, kind: input, shape index: {}]   ;;  %s293_s3 = inlined_call_operand.hbm [shape: f32[8,128], index: 3, kind: output, shape index: {}]  }
   0x1   :  { %9 = vsyncpa [#allocation7], 0 }
   0x2   :  { %10 = vsyncpa [#allocation5], 0  ;;  %s251_s12 = smov [#allocation3]   ;;  %s252_s14 = smov [#allocation6]  }
   0x3   :  { %s17_s13 = sshll.u32 %s251_s12, 4  ;;  %s26_s15 = sshll.u32 %s252_s14, 4  ;;  %s18_s13 = int_to_ptr.vmem [resolvable:$true] %s17_s13  ;;  %s27_s15 = int_to_ptr.vmem [resolvable:$true] %s26_s15 }
   0x4   :  { %s193_s16 = scalar_lea.vmem %s18_s13, 128  ;;  %p198_p1 = scmp.lt.s32.totalorder %s18_s13, %s18_s13 }
   0x5   :  { %p194_p0 = scmp.ne.s32.totalorder %s18_s13, %s193_s16  ;;  %p199_p2 = scmp.lt.s32.totalorder %s193_s16, %s193_s16 }
   0x7   :  { %p200_p3 = por %p199_p2, %p198_p1 }
   0x9   :  { %p201_p4 = pnand %p200_p3, %p194_p0 }
   0xb   :  { %204 = shalt.err (!%p201_p4)
}
   0xc   :  { %20 = dma.hbm_to_vmem [thread:$0]  %s290_s0, 128, %s18_s13, [#allocation4]  }
   0xd   :  { %s213_s19 = scalar_lea.vmem %s27_s15, 512  ;;  %p218_p6 = scmp.lt.s32.totalorder %s27_s15, %s27_s15 }
   0xe   :  { %p214_p5 = scmp.ne.s32.totalorder %s27_s15, %s213_s19  ;;  %p219_p7 = scmp.lt.s32.totalorder %s213_s19, %s213_s19 }
  0x10   :  { %p220_p8 = por %p219_p7, %p218_p6 }
  0x12   :  { %p221_p9 = pnand %p220_p8, %p214_p5 }
  0x14   :  { %224 = shalt.err (!%p221_p9)
}
  0x15   :  { %s253_s20 = smov 128   ;;  %s254_s21 = smov 8  }
  0x16   :  { %32 = dma.hbm_to_vmem [thread:$0]  %s291_s1, 512, %s27_s15, [#allocation7], %s253_s20, %s253_s20, %s254_s21  }
  0x17   :  { %245 = dma.done.wait [#allocation4], 128  }
  0x18   :  { %246 = vsyncadd [#allocation4], 4294967168 }
  0x19   :  { %247 = dma.done.wait [#allocation7], 512  }
  0x1a   :  { %248 = vsyncadd [#allocation7], 4294966784  ;;  %v255_v0 = vmov 0.0   ;;  %vm256_vm0 = vmmov 0   ;;  %v51_v1 = vld [vmem:[#allocation6 + $0x18] sm:$0xff]  ;;  %v50_v2 = vld [vmem:[#allocation6 + $0x10] sm:$0xff] }
  0x1b   :  { %165 = vmatprep.subr.mxu0 %v255_v0  ;;  %173 = vmatprep.mubr.msk.f32.mxu0 %vm256_vm0, %v255_v0  ;;  %v49_v3 = vld [vmem:[#allocation6 + $0x8] sm:$0xff]  ;;  %v48_v4 = vld [vmem:[#allocation6] sm:$0xff]  ;;  %v47_v5 = vld [vmem:[#allocation3] sm:$0xff]  ;;  %vm52_vm1 = vcmask 261120   ;;  %s257_s24 = smov [#allocation8]  }
  0x1c   :  { %166 = vmatpush3.msra.mxu0 %v51_v1  ;;  %v159_v6 = vld [vmem:[%s292_s2] ss:$0 sm:$0xff]  ;;  %s148_s25 = sshll.u32 %s257_s24, 4  ;;  %s149_s25 = int_to_ptr.vmem [resolvable:$true] %s148_s25 }
  0x1d   :  { %167 = vmatprep.subr.mxu0 %v255_v0  ;;  %s225_s26 = scalar_lea.vmem %s149_s25, 128  ;;  %p230_p11 = scmp.lt.s32.totalorder %s149_s25, %s149_s25 }
  0x1e   :  { %168 = vmatpush3.msra.mxu0 %v50_v2  ;;  %p226_p10 = scmp.ne.s32.totalorder %s149_s25, %s225_s26  ;;  %p231_p12 = scmp.lt.s32.totalorder %s225_s26, %s225_s26 }
  0x1f   :  { %169 = vmatprep.subr.mxu0 %v255_v0 }
  0x20   :  { %170 = vmatpush3.msra.mxu0 %v49_v3  ;;  %p232_p13 = por %p231_p12, %p230_p11 }
  0x21   :  { %171 = vmatprep.subr.mxu0 %v255_v0 }
  0x22   :  { %172 = vmatpush3.msra.mxu0 %v48_v4  ;;  %p233_p0 = pnand %p232_p13, %p226_p10 }
  0x23   :  { %174 = vmatmul.mubr.msk.f32.vlgmr.msra.gmra.mxu0 %vm52_vm1, %v47_v5 }
  0xe3   :  { %v122_v7 = vpop.f32.mrf.mxu0 }
  0xe4   :  { %v139_v8 = vadd.f32 %v159_v6, %v122_v7 }
  0xe5   :  { %v175_v9 = vpop.f32.mrf.mxu0 }
  0xe6   :  { %183 = vtanh.f32 %v139_v8 }
  0xf3   :  { %v184_v10 = vpop.eup %183 }
  0xf4   :  { %141 = vst [vmem:[#allocation8] sm:$0xff] %v184_v10 }
  0xf5   :  { %236 = shalt.err (!%p233_p0)
}
  0xf6   :  { %151 = dma.vmem_to_hbm [thread:$0]  %s149_s25, 128, %s293_s3, [#allocation5]  }
  0xf7   :  { %249 = dma.done.wait [#allocation5], 128  }
  0xf8   :  { %250 = vsyncadd [#allocation5], 4294967168 }
  0xf9   :  { %155 = vsyncpa [#allocation4], 1 }
  0xfa   :  { %156 = vsyncpa [#allocation7], 1 }
  0xfb   :  { %157 = vsyncpa [#allocation5], 1 }

</bundles_post_ra>
